<compile_context>
chip_gen: v6e
topology: v6e:2x2x1
jax: 0.10.0
libtpu: 0.0.40
codegen_flags: <defaults>
</compile_context>

<pallas_src>
import functools

import numpy as np
import jax
import jax.numpy as jnp
from jax import lax
from jax.experimental import pallas as pl
from jax.experimental.pallas import tpu as pltpu

K = 4          # kernel size
STRIDE = 2
PAD = 1

# For output parity p (= output index % 2): (padded-input offset d, tap k) pairs
# that contribute.  Derived from out = in*STRIDE - PAD + k with 1-pixel padding:
#   k = p + (K - 1 - PAD) - STRIDE*d, keeping 0 <= k < K.
_TAPS = {0: ((0, 3), (1, 1)),
         1: ((1, 2), (2, 0))}
_NOFF = 3      # union of offsets d used by both parities: {0, 1, 2}


def _phase_toeplitz_weight(w_pt, W):
    """Build the (3, (W+2)*Cin, 2*W*2*Cout) block-Toeplitz phase weight.

    w_k[dh, c*Cin+ci, ((ph*W + n)*2 + pw)*Cout + co] = w_pt[ci, co, kh, kw]
      if (dh, kh) in _TAPS[ph] and c == n + dc with (dc, kw) in _TAPS[pw],
      else 0.
    """
    Cin, Cout = w_pt.shape[0], w_pt.shape[1]
    # Row-parity tap selector A[ph, dh, kh] (constant 0/1, plain numpy).
    A = np.zeros((2, _NOFF, K), np.float32)
    for ph, taps in _TAPS.items():
        for d, k in taps:
            A[ph, d, k] = 1.0
    # Column Toeplitz selector B[pw, c, n, kw] (constant 0/1, plain numpy).
    B = np.zeros((2, W + 2, W, K), np.float32)
    for pw, taps in _TAPS.items():
        for d, k in taps:
            for n in range(W):
                B[pw, n + d, n, k] = 1.0
    # (dh, c, ci, ph, n, pw, co)
    w_k = jnp.einsum("pdh,qcnw,iohw->dcipnqo",
                     jnp.asarray(A), jnp.asarray(B), w_pt.astype(jnp.float32))
    return w_k.reshape(_NOFF, (W + 2) * Cin, 2 * W * 2 * Cout)


def _convt_relu_kernel(x_ref, w_ref, b_ref, o_ref, *, tile_h):
    # x_ref: (1, H+2, (W+2)*Cin) bf16  padded input, flattened over (col, Cin)
    # w_ref: (3, (W+2)*Cin, OUTW) bf16 block-Toeplitz phase weight
    # b_ref: (1, OUTW)            f32
    # o_ref: (1, tile_h, OUTW)    f32  slab rows m for this row tile
    t = pl.program_id(1)
    row0 = pl.multiple_of(t * tile_h, tile_h)
    # One aligned window load, then three static sublane-offset views.
    x_win = x_ref[0, pl.ds(row0, tile_h + 2), :]           # (tile_h+2, (W+2)*Cin)

    acc = jnp.zeros(o_ref.shape[1:], jnp.float32)          # (tile_h, OUTW)
    for dh in range(_NOFF):                                # unrolled, 3 matmuls
        acc += jnp.dot(x_win[dh:dh + tile_h, :], w_ref[dh],
                       preferred_element_type=jnp.float32)
    acc += b_ref[...]
    o_ref[0] = jnp.maximum(acc, 0.0).astype(o_ref.dtype)


def cnn_transposed_layer(x_nchw, w_pt, bias, *, tile_h=8):
    """ConvTranspose2d(k=4, s=2, p=1) + ReLU.

    x_nchw: (N, Cin, H, W) f32
    w_pt:   (Cin, Cout, K, K)  PyTorch ConvTranspose2d weight layout
    bias:   (Cout,)
    returns (N, Cout, 2H, 2W) f32 (NCHW, matching the PyTorch module)
    """
    N, Cin, H, W = x_nchw.shape
    Cout = w_pt.shape[1]
    Hout, Wout = STRIDE * H, STRIDE * W
    OUTW = 2 * Wout * Cout                 # both row parities, lane-dense
    if H % tile_h != 0:
        tile_h = H
    T = H // tile_h

    # ---- wrapper glue (plain JAX): layout, pad-by-1, weight / bias prep ----
    x_nhwc = jnp.transpose(x_nchw, (0, 2, 3, 1))
    x_pad = jnp.pad(x_nhwc, ((0, 0), (1, 1), (1, 1), (0, 0)))
    x_flat = x_pad.reshape(N, H + 2, (W + 2) * Cin).astype(jnp.bfloat16)

    w_k = _phase_toeplitz_weight(w_pt, W).astype(jnp.bfloat16)
    b_slab = jnp.tile(bias.astype(jnp.float32), OUTW // Cout).reshape(1, OUTW)

    slab = pl.pallas_call(
        functools.partial(_convt_relu_kernel, tile_h=tile_h),
        out_shape=jax.ShapeDtypeStruct((N, H, OUTW), jnp.float32),
        grid_spec=pltpu.PrefetchScalarGridSpec(
            num_scalar_prefetch=0,
            grid=(N, T),
            in_specs=[
                pl.BlockSpec((1, H + 2, (W + 2) * Cin), lambda n, t: (n, 0, 0)),
                pl.BlockSpec((_NOFF, (W + 2) * Cin, OUTW), lambda n, t: (0, 0, 0)),
                pl.BlockSpec((1, OUTW), lambda n, t: (0, 0)),
            ],
            out_specs=pl.BlockSpec((1, tile_h, OUTW), lambda n, t: (n, t, 0)),
        ),
        compiler_params=pltpu.CompilerParams(
            dimension_semantics=("parallel", "parallel"),
            vmem_limit_bytes=32 * 1024 * 1024),
    )(x_flat, w_k, b_slab)

    # slab[n, m, ph*(Wout*Cout) + ow*Cout + co] == out[n, 2m+ph, ow, co]
    out_nhwc = slab.reshape(N, Hout, Wout, Cout)
    return jnp.transpose(out_nhwc, (0, 3, 1, 2))


def _reference(x_nchw, w_pt, bias):
    # Independent f32 reference via lax.conv_general_dilated (lhs dilation = stride).
    w_oihw = jnp.transpose(jnp.flip(w_pt, axis=(2, 3)), (1, 0, 2, 3))
    y = lax.conv_general_dilated(
        x_nchw, w_oihw,
        window_strides=(1, 1),
        padding=((K - 1 - PAD, K - 1 - PAD), (K - 1 - PAD, K - 1 - PAD)),
        lhs_dilation=(STRIDE, STRIDE),
        dimension_numbers=("NCHW", "OIHW", "NCHW"),
    )
    y = y + bias[None, :, None, None]
    return jnp.maximum(y, 0.0)


if __name__ == "__main__":
    key = jax.random.PRNGKey(0)
    k1, k2, k3 = jax.random.split(key, 3)

    N, Cin, Cout, H, W = 2, 4, 8, 16, 16
    x = jax.random.normal(k1, (N, Cin, H, W), dtype=jnp.float32)
    # PyTorch ConvTranspose2d weight shape: (in_channels, out_channels, kH, kW)
    w = jax.random.normal(k2, (Cin, Cout, K, K), dtype=jnp.float32) * 0.1
    b = jax.random.normal(k3, (Cout,), dtype=jnp.float32) * 0.1

    fn = jax.jit(cnn_transposed_layer)
    out = jax.block_until_ready(fn(x, w, b))
    ref = jax.block_until_ready(_reference(x, w, b))

    assert out.shape == (N, Cout, STRIDE * H, STRIDE * W)
    max_err = float(jnp.max(jnp.abs(out - ref)))
    # bf16 operands into the MXU (f32 accumulation) -> loosened tolerance.
    assert jnp.allclose(out, ref, atol=3e-2, rtol=3e-2), (
        f"mismatch vs reference (max abs err {max_err})")

    print("KERNEL_OK")
</pallas_src>

<mosaic_0001>
module attributes {stable_mosaic.version = 11 : i64} {
  func.func @_convt_relu_kernel(%arg0: i32, %arg1: i32, %arg2: memref<1x18x72xbf16, #tpu.memory_space<vmem>>, %arg3: memref<3x72x512xbf16, #tpu.memory_space<vmem>>, %arg4: memref<1x512xf32, #tpu.memory_space<vmem>>, %arg5: memref<1x8x512xf32, #tpu.memory_space<vmem>>) attributes {dimension_semantics = [#tpu.dimension_semantics<parallel>, #tpu.dimension_semantics<parallel>], iteration_bounds = array<i64: 2, 2>, scalar_prefetch = 0 : i64, scratch_operands = 0 : i64, tpu.core_type = #tpu.core_type<tc>, window_params = [{transform_indices = @transform_0, window_bounds = array<i64: 1, 18, 72>}, {pipeline_mode = #tpu.pipeline_mode<synchronous>, transform_indices = @transform_1, window_bounds = array<i64: 3, 72, 512>}, {pipeline_mode = #tpu.pipeline_mode<synchronous>, transform_indices = @transform_2, window_bounds = array<i64: 1, 512>}, {transform_indices = @transform_3, window_bounds = array<i64: 1, 8, 512>}]} {
    %c8_i32 = arith.constant 8 : i32
    %0 = arith.muli %arg1, %c8_i32 : i32
    %1 = tpu.assume_multiple %0, 8 : i32
    %c0 = arith.constant 0 : index
    %2 = arith.index_cast %1 : i32 to index
    %c0_0 = arith.constant 0 : index
    %3 = vector.load %arg2[%c0, %2, %c0_0] : memref<1x18x72xbf16, #tpu.memory_space<vmem>>, vector<1x10x72xbf16>
    %4 = vector.shape_cast %3 : vector<1x10x72xbf16> to vector<10x72xbf16>
    %cst = arith.constant 0.000000e+00 : f32
    %5 = vector.broadcast %cst : f32 to vector<8x512xf32>
    %6 = vector.extract_strided_slice %4 {offsets = [0, 0], sizes = [8, 72], strides = [1, 1]} : vector<10x72xbf16> to vector<8x72xbf16>
    %c0_1 = arith.constant 0 : index
    %c0_2 = arith.constant 0 : index
    %c0_3 = arith.constant 0 : index
    %7 = vector.load %arg3[%c0_1, %c0_2, %c0_3] : memref<3x72x512xbf16, #tpu.memory_space<vmem>>, vector<1x72x512xbf16>
    %8 = vector.shape_cast %7 : vector<1x72x512xbf16> to vector<72x512xbf16>
    %cst_4 = arith.constant dense<0.000000e+00> : vector<8x512xf32>
    %9 = tpu.matmul %6, %8, %cst_4 {dimension_numbers = #tpu.dot_dimension_numbers<[1], [0], [0], [1], [0, 0, 1, 1], [], []>} : vector<8x72xbf16>, vector<72x512xbf16>, vector<8x512xf32> -> vector<8x512xf32>
    %10 = arith.addf %5, %9 : vector<8x512xf32>
    %11 = vector.extract_strided_slice %4 {offsets = [1, 0], sizes = [8, 72], strides = [1, 1]} : vector<10x72xbf16> to vector<8x72xbf16>
    %c1 = arith.constant 1 : index
    %c0_5 = arith.constant 0 : index
    %c0_6 = arith.constant 0 : index
    %12 = vector.load %arg3[%c1, %c0_5, %c0_6] : memref<3x72x512xbf16, #tpu.memory_space<vmem>>, vector<1x72x512xbf16>
    %13 = vector.shape_cast %12 : vector<1x72x512xbf16> to vector<72x512xbf16>
    %cst_7 = arith.constant dense<0.000000e+00> : vector<8x512xf32>
    %14 = tpu.matmul %11, %13, %cst_7 {dimension_numbers = #tpu.dot_dimension_numbers<[1], [0], [0], [1], [0, 0, 1, 1], [], []>} : vector<8x72xbf16>, vector<72x512xbf16>, vector<8x512xf32> -> vector<8x512xf32>
    %15 = arith.addf %10, %14 : vector<8x512xf32>
    %16 = vector.extract_strided_slice %4 {offsets = [2, 0], sizes = [8, 72], strides = [1, 1]} : vector<10x72xbf16> to vector<8x72xbf16>
    %c2 = arith.constant 2 : index
    %c0_8 = arith.constant 0 : index
    %c0_9 = arith.constant 0 : index
    %17 = vector.load %arg3[%c2, %c0_8, %c0_9] : memref<3x72x512xbf16, #tpu.memory_space<vmem>>, vector<1x72x512xbf16>
    %18 = vector.shape_cast %17 : vector<1x72x512xbf16> to vector<72x512xbf16>
    %cst_10 = arith.constant dense<0.000000e+00> : vector<8x512xf32>
    %19 = tpu.matmul %16, %18, %cst_10 {dimension_numbers = #tpu.dot_dimension_numbers<[1], [0], [0], [1], [0, 0, 1, 1], [], []>} : vector<8x72xbf16>, vector<72x512xbf16>, vector<8x512xf32> -> vector<8x512xf32>
    %20 = arith.addf %15, %19 : vector<8x512xf32>
    %c0_11 = arith.constant 0 : index
    %c0_12 = arith.constant 0 : index
    %21 = vector.load %arg4[%c0_11, %c0_12] : memref<1x512xf32, #tpu.memory_space<vmem>>, vector<1x512xf32>
    %22 = vector.broadcast %21 : vector<1x512xf32> to vector<8x512xf32>
    %23 = arith.addf %20, %22 : vector<8x512xf32>
    %cst_13 = arith.constant 0.000000e+00 : f32
    %24 = vector.broadcast %cst_13 : f32 to vector<8x512xf32>
    %25 = arith.maximumf %23, %24 : vector<8x512xf32>
    %c0_14 = arith.constant 0 : index
    %c0_15 = arith.constant 0 : index
    %c0_16 = arith.constant 0 : index
    %26 = vector.load %arg5[%c0_14, %c0_15, %c0_16] : memref<1x8x512xf32, #tpu.memory_space<vmem>>, vector<1x8x512xf32>
    %27 = vector.shape_cast %26 : vector<1x8x512xf32> to vector<8x512xf32>
    %28 = vector.shape_cast %25 : vector<8x512xf32> to vector<1x8x512xf32>
    tpu.vector_store %arg5[%c0_14, %c0_15, %c0_16], %28 {strides = array<i32>} : memref<1x8x512xf32, #tpu.memory_space<vmem>>, vector<1x8x512xf32>,
    return
  }
  func.func @transform_0(%arg0: i32, %arg1: i32) -> (i32, i32, i32) {
    %c0_i32 = arith.constant 0 : i32
    %c0_i32_0 = arith.constant 0 : i32
    %c0_i32_1 = arith.constant 0 : i32
    return %arg0, %c0_i32, %c0_i32_0 : i32, i32, i32
  }
  func.func @transform_1(%arg0: i32, %arg1: i32) -> (i32, i32, i32) {
    %c0_i32 = arith.constant 0 : i32
    %c0_i32_0 = arith.constant 0 : i32
    %c0_i32_1 = arith.constant 0 : i32
    %c0_i32_2 = arith.constant 0 : i32
    return %c0_i32, %c0_i32_0, %c0_i32_1 : i32, i32, i32
  }
  func.func @transform_2(%arg0: i32, %arg1: i32) -> (i32, i32) {
    %c0_i32 = arith.constant 0 : i32
    %c0_i32_0 = arith.constant 0 : i32
    %c0_i32_1 = arith.constant 0 : i32
    return %c0_i32, %c0_i32_0 : i32, i32
  }
  func.func @transform_3(%arg0: i32, %arg1: i32) -> (i32, i32, i32) {
    %c0_i32 = arith.constant 0 : i32
    %c0_i32_0 = arith.constant 0 : i32
    return %arg0, %arg1, %c0_i32 : i32, i32, i32
  }
}

</mosaic_0001>

<bundles_post_ra>
// kernel: tile.8
= control target key start
LH: loop header
LB: loop body
LE: loop exit
PB: predicated region body
PF: predicated region fallthrough
CT: control target
= control target key end

     0   :  { %s64_s0 = inlined_call_operand.vmem [shape: f32[8], index: 0, kind: input, shape index: {}]   ;;  %s65_s1 = inlined_call_operand.vmem [shape: f32[64,8], index: 1, kind: output, shape index: {}]  }
   0x1   :  { %v4_v0 = vld [vmem:[%s64_s0] ss:$0 sm:$0xff] }
   0x2   :  { %5 = vst [vmem:[%s65_s1] sm:$0xff] %v4_v0  ;;  %20 = vst [vmem:[%s65_s1 + $0x8] sm:$0xff] %v4_v0 }
   0x3   :  { %21 = vst [vmem:[%s65_s1 + $0x10] sm:$0xff] %v4_v0  ;;  %22 = vst [vmem:[%s65_s1 + $0x18] sm:$0xff] %v4_v0 }
   0x4   :  { %23 = vst [vmem:[%s65_s1 + $0x20] sm:$0xff] %v4_v0  ;;  %24 = vst [vmem:[%s65_s1 + $0x28] sm:$0xff] %v4_v0 }
   0x5   :  { %25 = vst [vmem:[%s65_s1 + $0x30] sm:$0xff] %v4_v0  ;;  %26 = vst [vmem:[%s65_s1 + $0x38] sm:$0xff] %v4_v0 }

// kernel: tile.9
= control target key start
LH: loop header
LB: loop body
LE: loop exit
PB: predicated region body
PF: predicated region fallthrough
CT: control target
= control target key end

     0   :  { %vm6_vm0 = vcmask 1043458   ;;  %s11_s6 = smov 3  ;;  %s14_s7 = smov 12  ;;  %vm8_vm1 = vcmask 64512   ;;  %vm20_vm2 = vcmask 1048512   ;;  %vm32_vm3 = vcmask 982912   ;;  %s417_s0 = inlined_call_operand.vmem [shape: f32[64,8], index: 0, kind: input, shape index: {}]   ;;  %s418_s1 = inlined_call_operand.vmem [shape: f32[1,512], index: 1, kind: output, shape index: {}]  }
   0x1   :  { %v220_v0 = vld [vmem:[%s417_s0 + $0xf] ss:$16 sm:%s11_s6]   ;;  %s35_s12 = smov 3  ;;  %s38_s15 = smov 12  ;;  %vm44_vm4 = vcmask 917312   ;;  %vm56_vm5 = vcmask 851712  }
   0x2   :  { %v221_v1 = vld [vmem:[%s417_s0 + $0xf] ss:$16 sm:%s14_s7]   ;;  %v224_v3 = vld [vmem:[%s417_s0 + $0xd] ss:$16 sm:%s35_s12]   ;;  %s268_s16 = smov 120   ;;  %s23_s19 = smov 3 }
   0x3   :  { %v17_v2 = vsel %vm6_vm0, %v221_v1, %v220_v0  ;;  %v225_v4 = vld [vmem:[%s417_s0 + $0xd] ss:$16 sm:%s38_s15]   ;;  %s26_s20 = smov 12  ;;  %v222_v6 = vld [vmem:[%s417_s0 + $0xe] ss:$16 sm:%s23_s19]   ;;  %s47_s25 = smov 3 }
   0x4   :  { %18 = vrot.lane.b32.xlu0 %v17_v2, %s268_s16  ;;  %v41_v5 = vsel %vm6_vm0, %v225_v4, %v224_v3  ;;  %v223_v7 = vld [vmem:[%s417_s0 + $0xe] ss:$16 sm:%s26_s20]   ;;  %s269_s26 = smov 104   ;;  %s50_s29 = smov 12  ;;  %vm68_vm6 = vcmask 786112   ;;  %vm80_vm7 = vcmask 720512  }
   0x5   :  { %42 = vrot.lane.b32.xlu1 %v41_v5, %s269_s26  ;;  %v29_v8 = vsel %vm6_vm0, %v223_v7, %v222_v6  ;;  %v226_v9 = vld [vmem:[%s417_s0 + $0xc] ss:$16 sm:%s47_s25]   ;;  %s59_s3 = smov 3  ;;  %s62_s4 = smov 12  ;;  %vm92_vm8 = vcmask 654912   ;;  %vm104_vm9 = vcmask 589312  }
   0x6   :  { %v227_v10 = vld [vmem:[%s417_s0 + $0xc] ss:$16 sm:%s50_s29]   ;;  %s270_s5 = smov 112   ;;  %v228_v12 = vld [vmem:[%s417_s0 + $0xb] ss:$16 sm:%s59_s3]   ;;  %s71_s8 = smov 3 }
   0x7   :  { %v53_v11 = vsel %vm6_vm0, %v227_v10, %v226_v9  ;;  %v229_v13 = vld [vmem:[%s417_s0 + $0xb] ss:$16 sm:%s62_s4]   ;;  %v230_v14 = vld [vmem:[%s417_s0 + $0xa] ss:$16 sm:%s71_s8]   ;;  %s74_s13 = smov 12  ;;  %s271_s14 = smov 96  }
   0x8   :  { %30 = vrot.lane.b32.xlu0 %v29_v8, %s270_s5  ;;  %v65_v15 = vsel %vm6_vm0, %v229_v13, %v228_v12  ;;  %v231_v16 = vld [vmem:[%s417_s0 + $0xa] ss:$16 sm:%s74_s13]   ;;  %s83_s17 = smov 3  ;;  %s86_s18 = smov 12  ;;  %vm116_vm10 = vcmask 523712   ;;  %vm128_vm11 = vcmask 458112  }
   0x9   :  { %54 = vrot.lane.b32.xlu1 %v53_v11, %s271_s14  ;;  %v77_v17 = vsel %vm6_vm0, %v231_v16, %v230_v14  ;;  %v232_v18 = vld [vmem:[%s417_s0 + $0x9] ss:$16 sm:%s83_s17]   ;;  %s95_s23 = smov 3  ;;  %s272_s24 = smov 88   ;;  %vm140_vm12 = vcmask 392512   ;;  %vm152_vm13 = vcmask 326912  }
   0xa   :  { %v233_v19 = vld [vmem:[%s417_s0 + $0x9] ss:$16 sm:%s86_s18]   ;;  %v234_v20 = vld [vmem:[%s417_s0 + $0x8] ss:$16 sm:%s95_s23]   ;;  %s98_s27 = smov 12  ;;  %s107_s30 = smov 3 }
   0xb   :  { %v89_v21 = vsel %vm6_vm0, %v233_v19, %v232_v18  ;;  %v235_v22 = vld [vmem:[%s417_s0 + $0x8] ss:$16 sm:%s98_s27]   ;;  %s110_s2 = smov 12  ;;  %s273_s3 = smov 80   ;;  %v236_v23 = vld [vmem:[%s417_s0 + $0x7] ss:$16 sm:%s107_s30]  }
   0xc   :  { %66 = vrot.lane.b32.xlu0 %v65_v15, %s272_s24  ;;  %s119_s6 = smov 3  ;;  %v101_v24 = vsel %vm6_vm0, %v235_v22, %v234_v20  ;;  %v237_v25 = vld [vmem:[%s417_s0 + $0x7] ss:$16 sm:%s110_s2]   ;;  %s122_s11 = smov 12  ;;  %vm164_vm14 = vcmask 261312   ;;  %vm176_vm15 = vcmask 195712  }
   0xd   :  { %78 = vrot.lane.b32.xlu1 %v77_v17, %s273_s3  ;;  %v238_v26 = vld [vmem:[%s417_s0 + $0x6] ss:$16 sm:%s119_s6]   ;;  %s274_s12 = smov 72   ;;  %s131_s15 = smov 3  ;;  %v113_v28 = vsel %vm6_vm0, %v237_v25, %v236_v23 }
   0xe   :  { %v239_v27 = vld [vmem:[%s417_s0 + $0x6] ss:$16 sm:%s122_s11]   ;;  %s134_s16 = smov 12  ;;  %v240_v29 = vld [vmem:[%s417_s0 + $0x5] ss:$16 sm:%s131_s15]   ;;  %s143_s19 = smov 3 }
   0xf   :  { %s275_s20 = smov 64   ;;  %v241_v30 = vld [vmem:[%s417_s0 + $0x5] ss:$16 sm:%s134_s16]   ;;  %s146_s23 = smov 12  ;;  %v125_v31 = vsel %vm6_vm0, %v239_v27, %v238_v26  ;;  %v242_v32 = vld [vmem:[%s417_s0 + $0x4] ss:$16 sm:%s143_s19]  }
  0x10   :  { %90 = vrot.lane.b32.xlu0 %v89_v21, %s274_s12  ;;  %s155_s26 = smov 3  ;;  %s158_s27 = smov 12  ;;  %v243_v33 = vld [vmem:[%s417_s0 + $0x4] ss:$16 sm:%s146_s23]   ;;  %v137_v34 = vsel %vm6_vm0, %v241_v30, %v240_v29 }
  0x11   :  { %102 = vrot.lane.b32.xlu1 %v101_v24, %s275_s20  ;;  %s276_s28 = smov 56   ;;  %s167_s2 = smov 3  ;;  %v244_v35 = vld [vmem:[%s417_s0 + $0x3] ss:$16 sm:%s155_s26]   ;;  %v149_v37 = vsel %vm6_vm0, %v243_v33, %v242_v32 }
  0x12   :  { %s170_s5 = smov 12  ;;  %s277_s6 = smov 48   ;;  %v245_v36 = vld [vmem:[%s417_s0 + $0x3] ss:$16 sm:%s158_s27]   ;;  %v246_v38 = vld [vmem:[%s417_s0 + $0x2] ss:$16 sm:%s167_s2]  }
  0x13   :  { %s179_s9 = smov 3  ;;  %v247_v39 = vld [vmem:[%s417_s0 + $0x2] ss:$16 sm:%s170_s5]   ;;  %s182_s14 = smov 12  ;;  %v161_v41 = vsel %vm6_vm0, %v245_v36, %v244_v35 }
  0x14   :  { %114 = vrot.lane.b32.xlu0 %v113_v28, %s276_s28  ;;  %s2_s15 = smov 3  ;;  %s278_s16 = smov 40   ;;  %v248_v42 = vld [vmem:[%s417_s0 + $0x1] ss:$16 sm:%s179_s9]   ;;  %v173_v46 = vsel %vm6_vm0, %v247_v39, %v246_v38 }
  0x15   :  { %126 = vrot.lane.b32.xlu1 %v125_v31, %s277_s6  ;;  %v3_v40 = vld [vmem:[%s417_s0] ss:$16 sm:%s2_s15]   ;;  %s4_s19 = smov 12  ;;  %s279_s24 = smov 32  }
  0x16   :  { %v5_v43 = vld [vmem:[%s417_s0] ss:$16 sm:%s4_s19]   ;;  %v249_v44 = vld [vmem:[%s417_s0 + $0x1] ss:$16 sm:%s182_s14]   ;;  %s280_s0 = smov 24   ;;  %s281_s27 = smov 16  }
  0x17   :  { %v7_v45 = vsel %vm6_vm0, %v5_v43, %v3_v40  ;;  %v185_v47 = vsel %vm6_vm0, %v249_v44, %v248_v42  ;;  %s282_s28 = smov 8   ;;  %vm188_vm0 = vcmask 130112  }
  0x18   :  { %138 = vrot.lane.b32.xlu0 %v137_v34, %s278_s16  ;;  %9 = vst.msk [vmem:[#allocation0] ss:$8 sm:$0xf] %vm8_vm1, %v7_v45  }
  0x19   :  { %150 = vrot.lane.b32.xlu1 %v149_v37, %s279_s24 }
  0x1c   :  { %162 = vrot.lane.b32.xlu0 %v161_v41, %s280_s0 }
  0x1d   :  { %174 = vrot.lane.b32.xlu1 %v173_v46, %s281_s27 }
  0x20   :  { %186 = vrot.lane.b32.xlu0 %v185_v47, %s282_s28 }
  0x76   :  { %v19_v48 = vpop.permute.xlu0 %18  }
  0x77   :  { %21 = vst.msk [vmem:[#allocation0] ss:$8 sm:$0xf] %vm20_vm2, %v19_v48   ;;  %v43_v49 = vpop.permute.xlu1 %42  }
  0x7a   :  { %v31_v50 = vpop.permute.xlu0 %30  }
  0x7b   :  { %33 = vst.msk [vmem:[#allocation0] ss:$8 sm:$0xf] %vm32_vm3, %v31_v50   ;;  %v55_v51 = vpop.permute.xlu1 %54  }
  0x7c   :  { %45 = vst.msk [vmem:[#allocation0] ss:$8 sm:$0xf] %vm44_vm4, %v43_v49  }
  0x7d   :  { %57 = vst.msk [vmem:[#allocation0] ss:$8 sm:$0xf] %vm56_vm5, %v55_v51  }
  0x7e   :  { %v67_v52 = vpop.permute.xlu0 %66  }
  0x7f   :  { %69 = vst.msk [vmem:[#allocation0] ss:$8 sm:$0xf] %vm68_vm6, %v67_v52   ;;  %v79_v53 = vpop.permute.xlu1 %78  }
  0x80   :  { %81 = vst.msk [vmem:[#allocation0] ss:$8 sm:$0xf] %vm80_vm7, %v79_v53  }
  0x82   :  { %v91_v54 = vpop.permute.xlu0 %90  }
  0x83   :  { %93 = vst.msk [vmem:[#allocation0] ss:$8 sm:$0xf] %vm92_vm8, %v91_v54   ;;  %v103_v55 = vpop.permute.xlu1 %102  }
  0x84   :  { %105 = vst.msk [vmem:[#allocation0] ss:$8 sm:$0xf] %vm104_vm9, %v103_v55  }
  0x86   :  { %v115_v56 = vpop.permute.xlu0 %114  }
  0x87   :  { %117 = vst.msk [vmem:[#allocation0] ss:$8 sm:$0xf] %vm116_vm10, %v115_v56   ;;  %v127_v57 = vpop.permute.xlu1 %126  }
  0x88   :  { %129 = vst.msk [vmem:[#allocation0] ss:$8 sm:$0xf] %vm128_vm11, %v127_v57  }
  0x8a   :  { %v139_v58 = vpop.permute.xlu0 %138  }
  0x8b   :  { %141 = vst.msk [vmem:[#allocation0] ss:$8 sm:$0xf] %vm140_vm12, %v139_v58   ;;  %v151_v59 = vpop.permute.xlu1 %150  }
  0x8c   :  { %153 = vst.msk [vmem:[#allocation0] ss:$8 sm:$0xf] %vm152_vm13, %v151_v59  }
  0x8e   :  { %v163_v60 = vpop.permute.xlu0 %162  }
  0x8f   :  { %165 = vst.msk [vmem:[#allocation0] ss:$8 sm:$0xf] %vm164_vm14, %v163_v60   ;;  %v175_v61 = vpop.permute.xlu1 %174  }
  0x90   :  { %177 = vst.msk [vmem:[#allocation0] ss:$8 sm:$0xf] %vm176_vm15, %v175_v61  }
  0x92   :  { %v187_v62 = vpop.permute.xlu0 %186  }
  0x93   :  { %189 = vst.msk [vmem:[#allocation0] ss:$8 sm:$0xf] %vm188_vm0, %v187_v62  }
  0x9a   :  { %v194_v63 = vld [vmem:[#allocation0] sm:$0x1]  ;;  %v199_v0 = vld [vmem:[#allocation0 + $0x8] sm:$0x1]  ;;  %v205_v1 = vld [vmem:[#allocation0 + $0x10] sm:$0x1] }
  0x9b   :  { %197 = vst [vmem:[%s418_s1] sm:$0x1] %v194_v63  ;;  %250 = vst [vmem:[%s418_s1 + $0x1] sm:$0x1] %v199_v0  ;;  %v212_v2 = vld [vmem:[#allocation0 + $0x18] sm:$0x1] }
  0x9c   :  { %251 = vst [vmem:[%s418_s1 + $0x2] sm:$0x1] %v205_v1  ;;  %252 = vst [vmem:[%s418_s1 + $0x3] sm:$0x1] %v212_v2 }

// kernel: cnn_transposed_layer.1
= control target key start
LH: loop header
LB: loop body
LE: loop exit
PB: predicated region body
PF: predicated region fallthrough
CT: control target
= control target key end

     0   :  { %s1269_s12 = smov 0   ;;  %s1271_s13 = smov 0   ;;  %s1528_s0 = inlined_call_operand.vmem [shape: bf16[2,18,72], index: 0, kind: input, shape index: {}]   ;;  %s1529_s1 = inlined_call_operand.vmem [shape: bf16[3,72,512], index: 1, kind: input, shape index: {}]   ;;  %s1530_s2 = inlined_call_operand.vmem [shape: f32[1,512], index: 2, kind: input, shape index: {}]   ;;  %s1531_s3 = inlined_call_operand.vmem [shape: f32[2,16,512], index: 3, kind: output, shape index: {}]  }
   0x1   :  { %s1273_s14 = smov 0   ;;  %s1275_s15 = smov 0  }
   0x2   :  { %s1277_s16 = smov 0  }
   0x3 LB: > { %s22_s17 = sadd.s32 1, %s1238_s14  ;;  %s25_s18 = sadd.s32 1, %s1242_s15  ;;  %s1246_s16 = sphi %s1277_s16, %s13_s16   ;;  %s1242_s15 = sphi %s1275_s15, %s1535_s15   ;;  %s1238_s14 = sphi %s1273_s14, %s1534_s14   ;;  %s1234_s13 = sphi %s1271_s13, %s1533_s13   ;;  %s1230_s12 = sphi %s1269_s12, %s1532_s12  }
   0x4   : > { %p23_p0 = scmp.ge.s32.totalorder %s22_s17, 2  ;;  %p963_p1 = scmp.ge.s32.totalorder %s1246_s16, 1 }
   0x5   : > { %p151_p2 = scmp.lt.s32.totalorder %s1246_s16, 5 }
   0x6   : > { %s1537_s17 = smov (%p23_p0, %s22_s17), 0  ;;  %s1539_s18 = smov (!%p23_p0, %s25_s18), %s1242_s15 }
   0x7   : > { %p152_p3 = pnand %p963_p1, %p151_p2  ;;  %p27_p4 = scmp.ge.s32.totalorder %s1539_s18, 2 }
   0x8   : > { %p179_p5 = scmp.lt.s32.totalorder (!%p152_p3), %s1234_s13, 1  ;;  %s968_s25 = sshll.u32 (!%p152_p3), %s1230_s12, 3 }
   0x9   : > { %s1541_s18 = smov (%p27_p4, %s1539_s18), 0  ;;  %155 = sbr.rel (%p152_p3) target bundleno = 279 (0x117), region = 32 }
   0xa   : > { %s195_s6 = sshra.s32 (!%p152_p3), %s968_s25, 3  ;;  %p186_p6 = scmp.lt.s32.totalorder (!%p152_p3), %s1230_s12, 1 }
   0xb   : > { %s969_s21 = sshll.u32 (!%p152_p3), %s195_s6, 2 }
   0xe   : > { %v986_v0 = vld [vmem:[%s1529_s1 + $0x110] sm:$0xff]  ;;  %vm344_vm0 = vcmask 1043456   ;;  %v987_v1 = vld [vmem:[%s1529_s1 + $0x118] sm:$0xff]  ;;  %v1248_v7 = vmov 0   ;;  %s1543_s13 = smov (!%p179_p5, %s1234_s13), 1  ;;  %v217_v26 = vld [vmem:[%s1529_s1 + $0x80] sm:$0xff] }
   0xf   : > { %v1006_v2 = vcombine.high %v986_v0, %v986_v0  ;;  %v1008_v3 = vcombine.high %v987_v1, %v987_v1  ;;  %v1005_v4 = vcombine.low %v986_v0, %v986_v0  ;;  %v1007_v5 = vcombine.low %v987_v1, %v987_v1  ;;  %v1127_v6 = vld [vmem:[%s1529_s1 + $0xf4] ss:$16 sps:$4 sm:$0xff]   ;;  %389 = vmatprep.mubr.bf16.mxu0 %v1248_v7  ;;  %v1129_v8 = vld [vmem:[%s1529_s1 + $0xfc] ss:$16 sps:$4 sm:$0xff]   ;;  %v1131_v11 = vld [vmem:[%s1529_s1 + $0xf0] ss:$16 sps:$4 sm:$0xff]  }
  0x10   : > { %430 = vmatprep.mubr.bf16.mxu1 %v1248_v7  ;;  %v1132_v12 = vld [vmem:[%s1529_s1 + $0xf8] ss:$16 sps:$4 sm:$0xff]   ;;  %s1081_s5 = smul.u32 12, %s1543_s13  ;;  %v1133_v13 = vld [vmem:[%s1529_s1 + $0xd4] ss:$16 sps:$4 sm:$0xff]   ;;  %v1030_v33 = vcombine.high %v217_v26, %v217_v26  ;;  %v1029_v35 = vcombine.low %v217_v26, %v217_v26  ;;  %vm340_vm1 = vcmask 588800  }
  0x11   : > { %1009 = vmatprep.subr.msk.bf16.mxu0 %vm344_vm0, %v1006_v2  ;;  %1011 = vmatprep.subr.msk.bf16.mxu1 %vm344_vm0, %v1008_v3  ;;  %v346_v9 = vsel %vm344_vm0, %v1005_v4, 0  ;;  %v352_v10 = vsel %vm344_vm0, %v1007_v5, 0  ;;  %v1135_v14 = vld [vmem:[%s1529_s1 + $0xdc] ss:$16 sps:$4 sm:$0xff]   ;;  %v1137_v15 = vld [vmem:[%s1529_s1 + $0xd0] ss:$16 sps:$4 sm:$0xff]  }
  0x12   : > { %364 = vmatpush1.bf16.msra.mxu0 %v346_v9  ;;  %405 = vmatpush1.bf16.msra.mxu1 %v352_v10  ;;  %s183_s20 = scalar_lea.vmem %s1528_s0, %s1081_s5  ;;  %v1138_v16 = vld [vmem:[%s1529_s1 + $0xd8] ss:$16 sps:$4 sm:$0xff]   ;;  %v1139_v17 = vld [vmem:[%s1529_s1 + $0xb4] ss:$16 sps:$4 sm:$0xff]   ;;  %v1141_v18 = vld [vmem:[%s1529_s1 + $0xbc] ss:$16 sps:$4 sm:$0xff]  }
  0x13   : > { %365 = vmatprep.subr.bf16.mxu0 %v1127_v6  ;;  %406 = vmatprep.subr.bf16.mxu1 %v1129_v8  ;;  %s198_s28 = scalar_lea.vmem %s183_s20, %s969_s21  ;;  %v1143_v19 = vld [vmem:[%s1529_s1 + $0xb0] ss:$16 sps:$4 sm:$0xff]   ;;  %v1144_v22 = vld [vmem:[%s1529_s1 + $0xb8] ss:$16 sps:$4 sm:$0xff]   ;;  %v1145_v23 = vld [vmem:[%s1529_s1 + $0x94] ss:$16 sps:$4 sm:$0xff]  }
  0x14   : > { %v1353_v20 = vld [vmem:[%s198_s28] sm:$0xf]  ;;  %v200_v21 = vld [vmem:[%s198_s28 + $0x4] sm:$0x1]  ;;  %v1147_v25 = vld [vmem:[%s1529_s1 + $0x9c] ss:$16 sps:$4 sm:$0xff]  }
  0x15   : > { %v1362_v24 = vcombine.low %v1353_v20, %v200_v21  ;;  %v218_v28 = vld [vmem:[%s1529_s1 + $0x88] sm:$0xff]  ;;  %v1149_v30 = vld [vmem:[%s1529_s1 + $0x90] ss:$16 sps:$4 sm:$0xff]   ;;  %v1158_v38 = vld [vmem:[%s1529_s1 + $0x64] ss:$16 sps:$4 sm:$0xff]   ;;  %v533_v39 = vsel %vm344_vm0, %v1029_v35, 0 }
  0x16   : > { %366 = vmatpush1.bf16.msra.mxu0 %v1131_v11  ;;  %407 = vmatpush1.bf16.msra.mxu1 %v1132_v12  ;;  %v1150_v31 = vld [vmem:[%s1529_s1 + $0x98] ss:$16 sps:$4 sm:$0xff]   ;;  %v1032_v34 = vcombine.high %v218_v28, %v218_v28  ;;  %v1031_v36 = vcombine.low %v218_v28, %v218_v28  ;;  %v1161_v41 = vld [vmem:[%s1529_s1 + $0x6c] ss:$16 sps:$4 sm:$0xff]   ;;  %v1156_v42 = vld [vmem:[%s1529_s1 + $0x60] ss:$16 sps:$4 sm:$0xff]  }
  0x17   : > { %367 = vmatprep.subr.bf16.mxu0 %v1133_v13  ;;  %408 = vmatprep.subr.bf16.mxu1 %v1135_v14  ;;  %v246_v27 = vshll.u32 %v1362_v24, 16  ;;  %v244_v29 = vshrl.u32 %v1362_v24, 16  ;;  %v1159_v43 = vld [vmem:[%s1529_s1 + $0x68] ss:$16 sps:$4 sm:$0xff]   ;;  %v1164_v44 = vld [vmem:[%s1529_s1 + $0x44] ss:$16 sps:$4 sm:$0xff]  }
  0x18   : > { %v539_v40 = vsel %vm344_vm0, %v1031_v36, 0  ;;  %v1167_v45 = vld [vmem:[%s1529_s1 + $0x4c] ss:$16 sps:$4 sm:$0xff]   ;;  %v1162_v46 = vld [vmem:[%s1529_s1 + $0x40] ss:$16 sps:$4 sm:$0xff]   ;;  %s1545_s12 = smov (!%p186_p6, %s1230_s12), 1 }
  0x19   : > { %v248_v32 = vrot.slane %v246_v27, 1  ;;  %v1165_v47 = vld [vmem:[%s1529_s1 + $0x48] ss:$16 sps:$4 sm:$0xff]   ;;  %v1170_v48 = vld [vmem:[%s1529_s1 + $0x24] ss:$16 sps:$4 sm:$0xff]   ;;  %s965_s8 = sshll.u32 %s1545_s12, 2 }
  0x1a   : > { %368 = vmatpush1.bf16.msra.mxu0 %v1137_v15  ;;  %409 = vmatpush1.bf16.msra.mxu1 %v1138_v16  ;;  %v1173_v49 = vld [vmem:[%s1529_s1 + $0x2c] ss:$16 sps:$4 sm:$0xff]   ;;  %v1168_v50 = vld [vmem:[%s1529_s1 + $0x20] ss:$16 sps:$4 sm:$0xff]   ;;  %v1171_v51 = vld [vmem:[%s1529_s1 + $0x28] ss:$16 sps:$4 sm:$0xff]  }
  0x1b   : > { %369 = vmatprep.subr.bf16.mxu0 %v1139_v17  ;;  %410 = vmatprep.subr.bf16.mxu1 %v1141_v18  ;;  %v249_v37 = vor.u32 %v248_v32, %v244_v29  ;;  %v1176_v52 = vld [vmem:[%s1529_s1 + $0x4] ss:$16 sps:$4 sm:$0xff]   ;;  %v1179_v53 = vld [vmem:[%s1529_s1 + $0xc] ss:$16 sps:$4 sm:$0xff]   ;;  %v1174_v56 = vld [vmem:[%s1529_s1] ss:$16 sps:$4 sm:$0xff]  }
  0x1c   : > { %v1053_v54 = vld [vmem:[%s1529_s1 + $0x1a0] sm:$0xff]  ;;  %v1054_v55 = vld [vmem:[%s1529_s1 + $0x1a8] sm:$0xff]  ;;  %v645_v16 = vrot.slane %v1362_v24, 1  ;;  %s966_s9 = sshll.u32 %s1543_s13, 3 }
  0x1d   : > { %v1177_v57 = vld [vmem:[%s1529_s1 + $0x8] ss:$16 sps:$4 sm:$0xff]   ;;  %v1072_v58 = vcombine.high %v1053_v54, %v1053_v54  ;;  %v1074_v59 = vcombine.high %v1054_v55, %v1054_v55  ;;  %v1071_v60 = vcombine.low %v1053_v54, %v1053_v54  ;;  %v1073_v61 = vcombine.low %v1054_v55, %v1054_v55  ;;  %v1186_v0 = vld [vmem:[%s1529_s1 + $0x184] ss:$16 sps:$4 sm:$0xff]   ;;  %v1189_v1 = vld [vmem:[%s1529_s1 + $0x18c] ss:$16 sps:$4 sm:$0xff]   ;;  %s190_s19 = sadd.s32 %s966_s9, %s965_s8 }
  0x1e   : > { %370 = vmatpush1.bf16.msra.mxu0 %v1143_v19  ;;  %411 = vmatpush1.bf16.msra.mxu1 %v1144_v22  ;;  %v1184_v2 = vld [vmem:[%s1529_s1 + $0x180] ss:$16 sps:$4 sm:$0xff]   ;;  %v1187_v3 = vld [vmem:[%s1529_s1 + $0x188] ss:$16 sps:$4 sm:$0xff]   ;;  %v1192_v4 = vld [vmem:[%s1529_s1 + $0x164] ss:$16 sps:$4 sm:$0xff]  }
  0x1f   : > { %371 = vmatprep.subr.bf16.mxu0 %v1145_v23  ;;  %412 = vmatprep.subr.bf16.mxu1 %v1147_v25  ;;  %v740_v62 = vsel %vm344_vm0, %v1071_v60, 0  ;;  %v746_v63 = vsel %vm344_vm0, %v1073_v61, 0  ;;  %v1195_v5 = vld [vmem:[%s1529_s1 + $0x16c] ss:$16 sps:$4 sm:$0xff]   ;;  %v1190_v6 = vld [vmem:[%s1529_s1 + $0x160] ss:$16 sps:$4 sm:$0xff]  }
  0x20   : > { %v1193_v8 = vld [vmem:[%s1529_s1 + $0x168] ss:$16 sps:$4 sm:$0xff]   ;;  %v1198_v9 = vld [vmem:[%s1529_s1 + $0x144] ss:$16 sps:$4 sm:$0xff]   ;;  %v1196_v10 = vld [vmem:[%s1529_s1 + $0x140] ss:$16 sps:$4 sm:$0xff]  }
  0x21   : > { %v1199_v11 = vld [vmem:[%s1529_s1 + $0x148] ss:$16 sps:$4 sm:$0xff]   ;;  %v1204_v12 = vld [vmem:[%s1529_s1 + $0x124] ss:$16 sps:$4 sm:$0xff]   ;;  %v1207_v13 = vld [vmem:[%s1529_s1 + $0x12c] ss:$16 sps:$4 sm:$0xff]  }
  0x22   : > { %372 = vmatpush1.bf16.msra.mxu0 %v1149_v30  ;;  %413 = vmatpush1.bf16.msra.mxu1 %v1150_v31  ;;  %v1202_v14 = vld [vmem:[%s1529_s1 + $0x120] ss:$16 sps:$4 sm:$0xff]   ;;  %v1205_v15 = vld [vmem:[%s1529_s1 + $0x128] ss:$16 sps:$4 sm:$0xff]   ;;  %s967_s12 = sshll.u32 %s190_s19, 3 }
  0x23   : > { %1033 = vmatprep.subr.msk.bf16.mxu0 %vm344_vm0, %v1030_v33  ;;  %1035 = vmatprep.subr.msk.bf16.mxu1 %vm344_vm0, %v1032_v34  ;;  %v839_v33 = vlaneseq  ;;  %s192_s21 = scalar_lea.vmem %s1531_s3, %s967_s12 }
  0x25   : > { %1010 = vmatmul.mubr.msk.bf16.vlgmr.msra.gmra.mxu0 %vm340_vm1, %v249_v37  ;;  %1012 = vmatmul.mubr.msk.bf16.vlgmr.msra.gmra.mxu1 %vm340_vm1, %v249_v37  ;;  %v840_v34 = vshrl.u32 %v839_v33, 7  ;;  %v837_v37 = vld [vmem:[%s1530_s2] sm:$0xf] }
  0x26   : > { %551 = vmatpush1.bf16.msra.mxu0 %v533_v39  ;;  %592 = vmatpush1.bf16.msra.mxu1 %v539_v40 }
  0x27   : > { %552 = vmatprep.subr.bf16.mxu0 %v1158_v38  ;;  %593 = vmatprep.subr.bf16.mxu1 %v1161_v41  ;;  %v841_v35 = vsub.s32 0, %v840_v34  ;;  %v849_v36 = vsub.s32 2, %v840_v34  ;;  %v845_v38 = vsub.s32 1, %v840_v34  ;;  %v853_v39 = vsub.s32 3, %v840_v34 }
  0x28   : > { %576 = vmatprep.mubr.bf16.mxu0 %v1248_v7  ;;  %617 = vmatprep.mubr.bf16.mxu1 %v1248_v7 }
  0x2a   : > { %553 = vmatpush1.bf16.msra.mxu0 %v1156_v42  ;;  %594 = vmatpush1.bf16.msra.mxu1 %v1159_v43  ;;  %v842_v42 = vrot.slane %v837_v37, %v841_v35  ;;  %v850_v43 = vrot.slane %v837_v37, %v849_v36 }
  0x2b   : > { %554 = vmatprep.subr.bf16.mxu0 %v1164_v44  ;;  %595 = vmatprep.subr.bf16.mxu1 %v1167_v45 }
  0x2e   : > { %555 = vmatpush1.bf16.msra.mxu0 %v1162_v46  ;;  %596 = vmatpush1.bf16.msra.mxu1 %v1165_v47  ;;  %v846_v46 = vrot.slane %v837_v37, %v845_v38  ;;  %v854_v47 = vrot.slane %v837_v37, %v853_v39 }
  0x2f   : > { %556 = vmatprep.subr.bf16.mxu0 %v1170_v48  ;;  %597 = vmatprep.subr.bf16.mxu1 %v1173_v49 }
  0x32   : > { %557 = vmatpush1.bf16.msra.mxu0 %v1168_v50  ;;  %598 = vmatpush1.bf16.msra.mxu1 %v1171_v51 }
  0x33   : > { %558 = vmatprep.subr.bf16.mxu0 %v1176_v52  ;;  %599 = vmatprep.subr.bf16.mxu1 %v1179_v53 }
  0x36   : > { %559 = vmatpush1.bf16.msra.mxu0 %v1174_v56  ;;  %600 = vmatpush1.bf16.msra.mxu1 %v1177_v57 }
  0x37   : > { %1075 = vmatprep.subr.msk.bf16.mxu0 %vm344_vm0, %v1072_v58  ;;  %1077 = vmatprep.subr.msk.bf16.mxu1 %vm344_vm0, %v1074_v59 }
  0x39   : > { %1034 = vmatmul.mubr.msk.bf16.vlgmr.msra.gmra.mxu0 %vm340_vm1, %v1353_v20  ;;  %1036 = vmatmul.mubr.msk.bf16.vlgmr.msra.gmra.mxu1 %vm340_vm1, %v1353_v20 }
  0x3a   : > { %758 = vmatpush1.bf16.msra.mxu0 %v740_v62  ;;  %799 = vmatpush1.bf16.msra.mxu1 %v746_v63 }
  0x3b   : > { %759 = vmatprep.subr.bf16.mxu0 %v1186_v0  ;;  %800 = vmatprep.subr.bf16.mxu1 %v1189_v1 }
  0x3c   : > { %783 = vmatprep.mubr.bf16.mxu0 %v1248_v7  ;;  %824 = vmatprep.mubr.bf16.mxu1 %v1248_v7  ;;  %v1201_v7 = vld [vmem:[%s1529_s1 + $0x14c] ss:$16 sps:$4 sm:$0xff]  }
  0x3e   : > { %760 = vmatpush1.bf16.msra.mxu0 %v1184_v2  ;;  %801 = vmatpush1.bf16.msra.mxu1 %v1187_v3 }
  0x3f   : > { %761 = vmatprep.subr.bf16.mxu0 %v1192_v4  ;;  %802 = vmatprep.subr.bf16.mxu1 %v1195_v5 }
  0x42   : > { %762 = vmatpush1.bf16.msra.mxu0 %v1190_v6  ;;  %803 = vmatpush1.bf16.msra.mxu1 %v1193_v8 }
  0x43   : > { %763 = vmatprep.subr.bf16.mxu0 %v1198_v9  ;;  %804 = vmatprep.subr.bf16.mxu1 %v1201_v7 }
  0x46   : > { %764 = vmatpush1.bf16.msra.mxu0 %v1196_v10  ;;  %805 = vmatpush1.bf16.msra.mxu1 %v1199_v11 }
  0x47   : > { %765 = vmatprep.subr.bf16.mxu0 %v1204_v12  ;;  %806 = vmatprep.subr.bf16.mxu1 %v1207_v13 }
  0x4a   : > { %766 = vmatpush1.bf16.msra.mxu0 %v1202_v14  ;;  %807 = vmatpush1.bf16.msra.mxu1 %v1205_v15 }
  0x4d   : > { %1076 = vmatmul.mubr.msk.bf16.vlgmr.msra.gmra.mxu0 %vm340_vm1, %v645_v16  ;;  %1078 = vmatmul.mubr.msk.bf16.vlgmr.msra.gmra.mxu1 %vm340_vm1, %v645_v16 }
  0xe5   : > { %v391_v17 = vpop.f32.mrf.mxu0  ;;  %v432_v18 = vpop.f32.mrf.mxu1 }
  0xe7   : > { %v393_v19 = vpop.f32.mrf.mxu0  ;;  %v434_v20 = vpop.f32.mrf.mxu1 }
  0xe9   : > { %v395_v21 = vpop.f32.mrf.mxu0  ;;  %v436_v22 = vpop.f32.mrf.mxu1 }
  0xeb   : > { %v396_v23 = vpop.f32.mrf.mxu0  ;;  %v437_v25 = vpop.f32.mrf.mxu1 }
  0xf9   : > { %v578_v26 = vpop.f32.mrf.mxu0  ;;  %v619_v27 = vpop.f32.mrf.mxu1 }
  0xfa   : > { %v579_v40 = vadd.f32 %v578_v26, %v391_v17  ;;  %v620_v41 = vadd.f32 %v619_v27, %v432_v18 }
  0xfb   : > { %v580_v24 = vpop.f32.mrf.mxu0  ;;  %v621_v28 = vpop.f32.mrf.mxu1 }
  0xfc   : > { %v581_v48 = vadd.f32 %v580_v24, %v393_v19  ;;  %v622_v49 = vadd.f32 %v621_v28, %v434_v20 }
  0xfd   : > { %v582_v29 = vpop.f32.mrf.mxu0  ;;  %v623_v30 = vpop.f32.mrf.mxu1 }
  0xff   : > { %v583_v31 = vpop.f32.mrf.mxu0  ;;  %v624_v32 = vpop.f32.mrf.mxu1 }
 0x10d   : > { %v785_v44 = vpop.f32.mrf.mxu0  ;;  %v826_v45 = vpop.f32.mrf.mxu1 }
 0x10e   : > { %v833_v50 = vadd.f32 %v785_v44, %v579_v40  ;;  %v835_v51 = vadd.f32 %v826_v45, %v620_v41 }
 0x10f   : > { %v787_v52 = vpop.f32.mrf.mxu0  ;;  %v828_v53 = vpop.f32.mrf.mxu1 }
 0x110   : > { %v859_v54 = vadd.f32 %v842_v42, %v833_v50  ;;  %v861_v55 = vadd.f32 %v850_v43, %v835_v51  ;;  %v834_v56 = vadd.f32 %v787_v52, %v581_v48  ;;  %v836_v57 = vadd.f32 %v828_v53, %v622_v49 }
 0x111   : > { %v789_v58 = vpop.f32.mrf.mxu0  ;;  %v830_v59 = vpop.f32.mrf.mxu1 }
 0x112   : > { %v863_v60 = vmax.f32 %v859_v54, 0.0  ;;  %v865_v61 = vmax.f32 %v861_v55, 0.0  ;;  %v860_v62 = vadd.f32 %v846_v46, %v834_v56  ;;  %v862_v63 = vadd.f32 %v854_v47, %v836_v57 }
 0x113   : > { %v790_v0 = vpop.f32.mrf.mxu0  ;;  %v831_v1 = vpop.f32.mrf.mxu1 }
 0x114   : > { %867 = vst [vmem:[%s192_s21] sm:$0xff] %v863_v60  ;;  %869 = vst [vmem:[%s192_s21 + $0x10] sm:$0xff] %v865_v61  ;;  %v864_v2 = vmax.f32 %v860_v62, 0.0  ;;  %v866_v3 = vmax.f32 %v862_v63, 0.0 }
 0x116   : > { %868 = vst [vmem:[%s192_s21 + $0x8] sm:$0xff] %v864_v2  ;;  %870 = vst [vmem:[%s192_s21 + $0x18] sm:$0xff] %v866_v3 }
 0x117 PF: > { %s13_s16 = sadd.s32 1, %s1246_s16   ;;  %s1532_s12 = smov %s1238_s14 }
 0x118   : > { %p10_p7 = scmp.ge.s32.totalorder %s13_s16, 6   ;;  %s1533_s13 = smov %s1242_s15 }
 0x119   : > { %s1534_s14 = smov %s1537_s17  ;;  %s1535_s15 = smov %s1541_s18 }
 0x11a   :  { %12 = sbr.rel (!%p10_p7) target bundleno = 3 (0x3), region = 65 }

</bundles_post_ra>
